<compile_context>
chip_gen: v5e
topology: v5e:2x2
jax: 0.10.0
libtpu: 0.0.40
codegen_flags: <defaults>
</compile_context>

<pallas_src>
import jax
import jax.numpy as jnp
from jax import lax
from jax.experimental import pallas as pl
from jax.experimental.pallas import tpu as pltpu

_LANES = 128
_SUBLANES = 8
_NUM_CORES = 2          # leading "parallel" grid axis (v7x has 2 TCs)
# Below this many elements, XLA's fused subtract-square-reduce beats the
# pallas_call launch + DMA setup cost.
_PALLAS_MIN_ELEMS = 1 << 15


def _make_sse_kernel(rows_valid, block_rows, tiles_per_core, needs_mask):
    """Build the per-tile SSE accumulation kernel with static config baked in."""

    def kernel(o_ref, t_ref, acc_ref):
        t = pl.program_id(1)

        @pl.when(t == 0)
        def _():
            acc_ref[...] = jnp.zeros_like(acc_ref)

        # Upcast in-kernel so HBM traffic stays in the native (e.g. bf16) dtype.
        diff = o_ref[...].astype(jnp.float32) - t_ref[...].astype(jnp.float32)
        sq = diff * diff

        if needs_mask:
            # Zero rows past the valid row count: covers the partial last tile
            # and the clamped/duplicated tiles assigned to the second core.
            c = pl.program_id(0)
            tile = c * tiles_per_core + t
            row = tile * block_rows + lax.broadcasted_iota(
                jnp.int32, (block_rows, _LANES), 0)
            sq = jnp.where(row < rows_valid, sq, 0.0)

        # Fold the tile onto the resident (1, 8, 128) accumulator block with
        # plain VPU adds (vreg-tile-aligned reshape; no per-step XLU reduce).
        acc_ref[...] += jnp.sum(
            sq.reshape(block_rows // _SUBLANES, _SUBLANES, _LANES),
            axis=0, keepdims=True)

    return kernel


def _beauty_loss_pallas(output, target, tile_rows):
    n = output.size
    flat_o = output.reshape(-1)
    flat_t = target.reshape(-1)

    # Lane-dense layout: pack elements along the 128-wide lane axis.
    rows = pl.cdiv(n, _LANES)
    padded = rows * _LANES
    if padded != n:
        # Only the sub-128 lane tail is padded; zeros contribute (0-0)^2 = 0.
        flat_o = jnp.pad(flat_o, (0, padded - n))
        flat_t = jnp.pad(flat_t, (0, padded - n))
    o2 = flat_o.reshape(rows, _LANES)   # no-copy view when n % 128 == 0
    t2 = flat_t.reshape(rows, _LANES)

    # Full-size blocks over the row axis; the last one may be partial (masked).
    block_rows = min(tile_rows, ((rows + _SUBLANES - 1) // _SUBLANES) * _SUBLANES)
    total_tiles = pl.cdiv(rows, block_rows)
    tiles_per_core = pl.cdiv(total_tiles, _NUM_CORES)
    even_split = tiles_per_core * _NUM_CORES == total_tiles
    needs_mask = (rows % block_rows != 0) or (not even_split)

    if even_split:
        def in_map(c, t):
            return (c * tiles_per_core + t, 0)
    else:
        # Clamp so the second core's out-of-range tiles re-read the last valid
        # tile (keeps every DMA in bounds); the row mask zeroes them anyway.
        max_tile = total_tiles - 1

        def in_map(c, t):
            return (jnp.minimum(c * tiles_per_core + t, max_tile), 0)

    in_spec = pl.BlockSpec((block_rows, _LANES), in_map)

    cost = pl.CostEstimate(
        flops=3 * n,
        transcendentals=0,
        bytes_accessed=n * (output.dtype.itemsize + target.dtype.itemsize)
        + _NUM_CORES * _SUBLANES * _LANES * 4,
    )

    partial = pl.pallas_call(
        _make_sse_kernel(rows, block_rows, tiles_per_core, needs_mask),
        out_shape=jax.ShapeDtypeStruct((_NUM_CORES, _SUBLANES, _LANES), jnp.float32),
        grid=(_NUM_CORES, tiles_per_core),
        in_specs=[in_spec, in_spec],
        # One resident accumulator block per core index; same block across the
        # (sequential, "arbitrary") reduction axis.
        out_specs=pl.BlockSpec((1, _SUBLANES, _LANES), lambda c, t: (c, 0, 0)),
        compiler_params=pltpu.CompilerParams(
            dimension_semantics=("parallel", "arbitrary"),
        ),
        cost_estimate=cost,
    )(o2, t2)

    # Single tiny reduce of the 2 x (8,128) per-core partials.
    return jnp.sum(partial)


def beauty_loss(output, target, *, tile_rows=2048, force_pallas=False):
    """sum((output - target)^2), matching nn.MSELoss(reduction='sum')."""
    assert output.shape == target.shape
    assert tile_rows % _SUBLANES == 0 and tile_rows >= _SUBLANES

    if not force_pallas and output.size < _PALLAS_MIN_ELEMS:
        # Tiny inputs (e.g. the documented batch*1 shape): plain XLA fusion is
        # strictly faster than paying the pallas_call launch overhead.
        return jnp.sum(
            (output.astype(jnp.float32) - target.astype(jnp.float32)) ** 2
        )

    return _beauty_loss_pallas(output, target, tile_rows)


if __name__ == "__main__":
    key = jax.random.PRNGKey(0)
    k1, k2, k3, k4, k5, k6 = jax.random.split(key, 6)

    # 1) Documented production shape: batch * 1 (exercises the masked,
    #    clamped-index-map single-tile path with the dual-core grid).
    batch = 8
    output = jax.random.normal(k1, (batch, 1), dtype=jnp.float32)
    target = jax.random.normal(k2, (batch, 1), dtype=jnp.float32)
    loss = beauty_loss(output, target, force_pallas=True)
    jax.block_until_ready(loss)
    ref = jnp.sum((output - target) ** 2)
    assert jnp.allclose(loss, ref, rtol=1e-5, atol=1e-5), (loss, ref)

    # 2) Larger batch, small tile: even tile split across the two-core axis,
    #    multi-step accumulation, no masking.
    batch2 = 4096
    output2 = jax.random.normal(k3, (batch2, 1), dtype=jnp.float32)
    target2 = jax.random.normal(k4, (batch2, 1), dtype=jnp.float32)
    loss2 = beauty_loss(output2, target2, tile_rows=8, force_pallas=True)
    jax.block_until_ready(loss2)
    ref2 = jnp.sum((output2 - target2) ** 2)
    assert jnp.allclose(loss2, ref2, rtol=1e-5, atol=1e-3), (loss2, ref2)

    # 3) Ragged bf16 case: odd tile count (clamped map), partial last tile
    #    (row mask), lane-tail zero pad, and the in-kernel f32 upcast.
    batch3 = 2500
    output3 = jax.random.normal(k5, (batch3, 1), dtype=jnp.bfloat16)
    target3 = jax.random.normal(k6, (batch3, 1), dtype=jnp.bfloat16)
    loss3 = beauty_loss(output3, target3, tile_rows=8, force_pallas=True)
    jax.block_until_ready(loss3)
    ref3 = jnp.sum(
        (output3.astype(jnp.float32) - target3.astype(jnp.float32)) ** 2
    )
    assert jnp.allclose(loss3, ref3, rtol=1e-4, atol=1e-2), (loss3, ref3)

    print("KERNEL_OK")
</pallas_src>

<mosaic_0001>
module attributes {stable_mosaic.version = 11 : i64} {
  func.func @kernel(%arg0: i32, %arg1: i32, %arg2: memref<8x128xf32, #tpu.memory_space<vmem>>, %arg3: memref<8x128xf32, #tpu.memory_space<vmem>>, %arg4: memref<1x8x128xf32, #tpu.memory_space<vmem>>) attributes {dimension_semantics = [#tpu.dimension_semantics<parallel>, #tpu.dimension_semantics<arbitrary>], iteration_bounds = array<i64: 2, 1>, scalar_prefetch = 0 : i64, scratch_operands = 0 : i64, tpu.core_type = #tpu.core_type<tc>, window_params = [{transform_indices = @transform_0, window_bounds = array<i64: 8, 128>}, {transform_indices = @transform_1, window_bounds = array<i64: 8, 128>}, {transform_indices = @transform_2, window_bounds = array<i64: 1, 8, 128>}]} {
    %c0_i32 = arith.constant 0 : i32
    %0 = arith.cmpi eq, %arg1, %c0_i32 : i32
    %1 = arith.extui %0 : i1 to i32
    %c0_i32_0 = arith.constant 0 : i32
    %2 = arith.cmpi ne, %1, %c0_i32_0 : i32
    scf.if %2 {
      %cst_12 = arith.constant 0.000000e+00 : f32
      %23 = vector.broadcast %cst_12 : f32 to vector<1x8x128xf32>
      %c0_13 = arith.constant 0 : index
      %c0_14 = arith.constant 0 : index
      %c0_15 = arith.constant 0 : index
      %24 = vector.load %arg4[%c0_13, %c0_14, %c0_15] : memref<1x8x128xf32, #tpu.memory_space<vmem>>, vector<1x8x128xf32>
      tpu.vector_store %arg4[%c0_13, %c0_14, %c0_15], %23 {strides = array<i32>} : memref<1x8x128xf32, #tpu.memory_space<vmem>>, vector<1x8x128xf32>,
    } else {
    }
    %c0 = arith.constant 0 : index
    %c0_1 = arith.constant 0 : index
    %3 = vector.load %arg2[%c0, %c0_1] : memref<8x128xf32, #tpu.memory_space<vmem>>, vector<8x128xf32>
    %c0_2 = arith.constant 0 : index
    %c0_3 = arith.constant 0 : index
    %4 = vector.load %arg3[%c0_2, %c0_3] : memref<8x128xf32, #tpu.memory_space<vmem>>, vector<8x128xf32>
    %5 = arith.subf %3, %4 : vector<8x128xf32>
    %6 = arith.mulf %5, %5 : vector<8x128xf32>
    %c1_i32 = arith.constant 1 : i32
    %7 = arith.muli %arg0, %c1_i32 : i32
    %8 = arith.addi %7, %arg1 : i32
    %c8_i32 = arith.constant 8 : i32
    %9 = arith.muli %8, %c8_i32 : i32
    %10 = tpu.iota {dimensions = array<i32: 0>} : vector<8x128xi32>
    %11 = vector.broadcast %9 : i32 to vector<8x128xi32>
    %12 = arith.addi %11, %10 : vector<8x128xi32>
    %c1_i32_4 = arith.constant 1 : i32
    %13 = vector.broadcast %c1_i32_4 : i32 to vector<8x128xi32>
    %14 = arith.cmpi slt, %12, %13 : vector<8x128xi32>
    %cst = arith.constant 0.000000e+00 : f32
    %15 = vector.broadcast %cst : f32 to vector<8x128xf32>
    %16 = arith.select %14, %6, %15 : vector<8x128xi1>, vector<8x128xf32>
    %c0_5 = arith.constant 0 : index
    %c0_6 = arith.constant 0 : index
    %c0_7 = arith.constant 0 : index
    %17 = vector.load %arg4[%c0_5, %c0_6, %c0_7] : memref<1x8x128xf32, #tpu.memory_space<vmem>>, vector<1x8x128xf32>
    %18 = vector.shape_cast %16 : vector<8x128xf32> to vector<1x8x128xf32>
    %cst_8 = arith.constant dense<0.000000e+00> : vector<8x128xf32>
    %19 = vector.multi_reduction <add>, %18, %cst_8 [0] : vector<1x8x128xf32> to vector<8x128xf32>
    %20 = vector.shape_cast %19 : vector<8x128xf32> to vector<1x8x128xf32>
    %21 = arith.addf %17, %20 : vector<1x8x128xf32>
    %c0_9 = arith.constant 0 : index
    %c0_10 = arith.constant 0 : index
    %c0_11 = arith.constant 0 : index
    %22 = vector.load %arg4[%c0_9, %c0_10, %c0_11] : memref<1x8x128xf32, #tpu.memory_space<vmem>>, vector<1x8x128xf32>
    tpu.vector_store %arg4[%c0_9, %c0_10, %c0_11], %21 {strides = array<i32>} : memref<1x8x128xf32, #tpu.memory_space<vmem>>, vector<1x8x128xf32>,
    return
  }
  func.func @transform_0(%arg0: i32, %arg1: i32) -> (i32, i32) {
    %c1_i32 = arith.constant 1 : i32
    %0 = arith.muli %arg0, %c1_i32 : i32
    %1 = arith.addi %0, %arg1 : i32
    %c0_i32 = arith.constant 0 : i32
    %2 = arith.minsi %1, %c0_i32 : i32
    %c0_i32_0 = arith.constant 0 : i32
    %c0_i32_1 = arith.constant 0 : i32
    return %2, %c0_i32_0 : i32, i32
  }
  func.func @transform_1(%arg0: i32, %arg1: i32) -> (i32, i32) {
    %c1_i32 = arith.constant 1 : i32
    %0 = arith.muli %arg0, %c1_i32 : i32
    %1 = arith.addi %0, %arg1 : i32
    %c0_i32 = arith.constant 0 : i32
    %2 = arith.minsi %1, %c0_i32 : i32
    %c0_i32_0 = arith.constant 0 : i32
    %c0_i32_1 = arith.constant 0 : i32
    return %2, %c0_i32_0 : i32, i32
  }
  func.func @transform_2(%arg0: i32, %arg1: i32) -> (i32, i32, i32) {
    %c0_i32 = arith.constant 0 : i32
    %c0_i32_0 = arith.constant 0 : i32
    %c0_i32_1 = arith.constant 0 : i32
    return %arg0, %c0_i32, %c0_i32_0 : i32, i32, i32
  }
}

</mosaic_0001>

<bundles_post_ra>
// kernel: tpu_custom_call.1
= control target key start
LH: loop header
LB: loop body
LE: loop exit
PB: predicated region body
PF: predicated region fallthrough
CT: control target
= control target key end

     0   :  { %7 = vsyncpa [#allocation3], 0  ;;  %s850_s0 = inlined_call_operand.hbm [shape: f32[1,128], index: 0, kind: input, shape index: {}]   ;;  %s851_s1 = inlined_call_operand.hbm [shape: f32[1,128], index: 1, kind: input, shape index: {}]   ;;  %s852_s2 = inlined_call_operand.hbm [shape: f32[2,8,128], index: 2, kind: output, shape index: {}]  }
   0x1   :  { %9 = vsyncpa [#allocation3 + $0x1], 0 }
   0x2   :  { %10 = vsyncpa [#allocation6], 0 }
   0x3   :  { %12 = vsyncpa [#allocation6 + $0x1], 0 }
   0x4   :  { %13 = vsyncpa [#allocation4], 0 }
   0x5   :  { %15 = vsyncpa [#allocation4 + $0x1], 0  ;;  %s705_s9 = smov 0   ;;  %s707_s10 = smov 0  }
   0x6   :  { %s709_s11 = smov 0   ;;  %s711_s12 = smov 0  }
   0x7   :  { %s713_s13 = smov 0   ;;  %s715_s14 = smov 0  }
   0x8   :  { %s717_s15 = smov 0   ;;  %s719_s16 = smov 0  }
   0x9 LB: > { %s388_s17 = sadd.s32 4294967295, %s682_s16   ;;  %s389_s18 = sadd.s32 4294967294, %s682_s16   ;;  %s682_s16 = sphi %s719_s16, %s21_s16   ;;  %s678_s15 = sphi %s717_s15, %s862_s15   ;;  %s674_s14 = sphi %s715_s14, %s861_s14   ;;  %s670_s13 = sphi %s713_s13, %s840_s13   ;;  %s666_s12 = sphi %s711_s12, %s860_s12   ;;  %s662_s11 = sphi %s709_s11, %s859_s11   ;;  %s658_s10 = sphi %s707_s10, %s858_s10   ;;  %s654_s9 = sphi %s705_s9, %s857_s9  }
   0xa   : > { %s33_s19 = sadd.s32 1, %s678_s15  ;;  %p651_p1 = scmp.ne.s32.totalorder %s670_s13, 0 }
   0xb   : > { %p35_p0 = scmp.ge.s32.totalorder %s33_s19, 2  ;;  %p54_p2 = scmp.eq.s32.totalorder %s682_s16, 0 }
   0xc   : > { %p59_p3 = scmp.ne.s32.totalorder %s670_s13, %s666_s12  ;;  %p60_p5 = scmp.eq.s32.totalorder %s388_s17, 0 }
   0xd   : > { %s864_s19 = smov (%p35_p0, %s33_s19), 0  ;;  %p751_p4 = por %p651_p1, %p54_p2 }
   0xe   : > { %p755_p6 = por %p60_p5, %p59_p3  ;;  %s101_s22 = ssub.s32 %s678_s15, %s864_s19 }
   0xf   : > { %p102_p7 = scmp.eq.s32.totalorder %s101_s22, 0  ;;  %s104_s23 = sadd.s32 1, %s662_s11 }
  0x10   : > { %p114_p8 = scmp.ne.s32.totalorder %s662_s11, %s658_s10  ;;  %p115_p9 = scmp.eq.s32.totalorder %s388_s17, 1 }
  0x11   : > { %s763_s24 = scalar_select %p102_p7, %s662_s11, %s104_s23  }
  0x12   : > { %p120_p10 = scmp.ne.s32.totalorder %s658_s10, %s654_s9  ;;  %p121_p11 = scmp.eq.s32.totalorder %s389_s18, 1 }
  0x13   : > { %p769_p12 = por %p115_p9, %p114_p8  ;;  %p391_p0 = scmp.ge.s32.totalorder %s682_s16, 2 }
  0x14   : > { %p773_p13 = por %p121_p11, %p120_p10 }
  0x15   : > { %137 = sbr.rel (%p391_p0) target bundleno = 70 (0x46), region = 16 }
  0x1a   : > { %140 = sbr.rel (!%p751_p4) target bundleno = 48 (0x30), region = 20 }
  0x1f   : > { %153 = vsyncadd [#allocation3], 112  ;;  %s156_s29 = sshll.u32 %s850_s0, 4  ;;  %s684_s30 = smov [#allocation2]   ;;  %s157_s29 = int_to_ptr.hbm [resolvable:$true] %s156_s29 }
  0x20   : > { %s158_s3 = sshll.u32 %s684_s30, 4  ;;  %s493_s4 = sshra.s32 %s157_s29, 4  ;;  %s159_s3 = int_to_ptr.vmem [resolvable:$true] %s158_s3  ;;  %s494_s4 = int_to_ptr.hbm [resolvable:$true] %s493_s4 }
  0x21   : > { %s500_s5 = scalar_lea.hbm %s494_s4, 1  ;;  %s504_s8 = scalar_lea.hbm %s850_s0, 1 }
  0x22   : > { %p501_p1 = scmp.ne.s32.totalorder %s494_s4, %s500_s5  ;;  %p506_p2 = scmp.lt.s32.totalorder %s504_s8, %s500_s5 }
  0x24   : > { %p508_p3 = pnand %p506_p2, %p501_p1 }
  0x26   : > { %511 = shalt.err (!%p508_p3)
}
  0x27   : > { %s512_s12 = sshra.s32 %s159_s3, 4  ;;  %s523_s18 = scalar_lea.vmem %s684_s30, 16  ;;  %s513_s12 = int_to_ptr.vmem [resolvable:$true] %s512_s12 }
  0x28   : > { %s519_s17 = scalar_lea.vmem %s513_s12, 1 }
  0x29   : > { %p520_p5 = scmp.ne.s32.totalorder %s513_s12, %s519_s17  ;;  %p525_p7 = scmp.lt.s32.totalorder %s523_s18, %s519_s17 }
  0x2b   : > { %p527_p8 = pnand %p525_p7, %p520_p5 }
  0x2d   : > { %530 = shalt.err (!%p527_p8)
}
  0x2e   : > { %s685_s22 = smov 16   ;;  %s686_s23 = smov 1  }
  0x2f   : > { %164 = dma.hbm_to_vmem [thread:$0]  %s157_s29, 16, %s159_s3, [#allocation3], %s685_s22, %s685_s22, %s686_s23  }
  0x30 PF: > { %167 = sbr.rel (!%p751_p4) target bundleno = 70 (0x46), region = 24 }
  0x35   : > { %180 = vsyncadd [#allocation6], 112  ;;  %s183_s4 = sshll.u32 %s851_s1, 4  ;;  %s687_s5 = smov [#allocation5]   ;;  %s184_s4 = int_to_ptr.hbm [resolvable:$true] %s183_s4 }
  0x36   : > { %s185_s6 = sshll.u32 %s687_s5, 4  ;;  %s532_s30 = sshra.s32 %s184_s4, 4  ;;  %s186_s6 = int_to_ptr.vmem [resolvable:$true] %s185_s6  ;;  %s533_s30 = int_to_ptr.hbm [resolvable:$true] %s532_s30 }
  0x37   : > { %s539_s7 = scalar_lea.hbm %s533_s30, 1  ;;  %s543_s29 = scalar_lea.hbm %s851_s1, 1 }
  0x38   : > { %p540_p9 = scmp.ne.s32.totalorder %s533_s30, %s539_s7  ;;  %p545_p10 = scmp.lt.s32.totalorder %s543_s29, %s539_s7 }
  0x3a   : > { %p547_p11 = pnand %p545_p10, %p540_p9 }
  0x3c   : > { %550 = shalt.err (!%p547_p11)
}
  0x3d   : > { %s551_s20 = sshra.s32 %s186_s6, 4  ;;  %s562_s17 = scalar_lea.vmem %s687_s5, 16  ;;  %s552_s20 = int_to_ptr.vmem [resolvable:$true] %s551_s20 }
  0x3e   : > { %s558_s3 = scalar_lea.vmem %s552_s20, 1 }
  0x3f   : > { %p559_p4 = scmp.ne.s32.totalorder %s552_s20, %s558_s3  ;;  %p564_p1 = scmp.lt.s32.totalorder %s562_s17, %s558_s3 }
  0x41   : > { %p566_p2 = pnand %p564_p1, %p559_p4 }
  0x43   : > { %569 = shalt.err (!%p566_p2)
}
  0x44   : > { %s688_s18 = smov 16   ;;  %s689_s22 = smov 1  }
  0x45   : > { %191 = dma.hbm_to_vmem [thread:$0]  %s184_s4, 16, %s186_s6, [#allocation6], %s688_s18, %s688_s18, %s689_s22  }
  0x46 PF: > { %p398_p3 = scmp.ge.s32.totalorder %s682_s16, 1  ;;  %p193_p5 = scmp.lt.s32.totalorder %s682_s16, 3 }
  0x48   : > { %p194_p7 = pnand %p398_p3, %p193_p5 }
  0x49   : > { %s199_s23 = sand.u32 (!%p194_p7), 1, %s670_s13  }
  0x4a   : > { %197 = sbr.rel (%p194_p7) target bundleno = 98 (0x62), region = 28  ;;  %s399_s27 = sshll.u32 (!%p194_p7), %s199_s23, 3 }
  0x4b   : > { %s200_s28 = scalar_lea.sflag (!%p194_p7), [#allocation3], %s199_s23  ;;  %s203_s5 = scalar_lea.vmem (!%p194_p7), [#allocation2], %s399_s27 }
  0x4f   : > { %636 = dma.done.wait (%p755_p6), %s200_s28, 128  }
  0x50   : > { %638 = vsyncadd (%p755_p6), %s200_s28, 4294967168  ;;  %s210_s4 = scalar_lea.sflag [#allocation6], %s199_s23  ;;  %s213_s6 = scalar_lea.vmem [#allocation5], %s399_s27 }
  0x51   : > { %640 = dma.done.wait (%p755_p6), %s210_s4, 128  }
  0x52   : > { %642 = vsyncadd (%p755_p6), %s210_s4, 4294967168  ;;  %s402_s30 = sshll.u32 %s674_s14, 3  ;;  %v261_v0 = vlaneseq  ;;  %s237_s7 = sand.u32 1, %s658_s10   ;;  %v255_v4 = vld [vmem:[%s203_s5] sm:$0xff]  ;;  %v256_v5 = vld [vmem:[%s213_s6] sm:$0xff] }
  0x53   : > { %v263_v2 = vstv %s402_s30  ;;  %s401_s8 = sshll.u32 %s237_s7, 3  ;;  %s282_s20 = scalar_lea.hbm %s852_s2, %s402_s30  ;;  %v257_v6 = vsub.f32 %v255_v4, %v256_v5 }
  0x54   : > { %v262_v1 = vshrl.u32 %v261_v0, 7  ;;  %s239_s21 = scalar_lea.vmem [#allocation7], %s401_s8  ;;  %s286_s17 = sshll.u32 %s282_s20, 4  ;;  %s287_s17 = int_to_ptr.hbm [resolvable:$true] %s286_s17 }
  0x55   : > { %v258_v7 = vmul.f32 %v257_v6, %v257_v6  ;;  %s284_s3 = sshll.u32 %s239_s21, 4  ;;  %s272_s14 = scalar_lea.sflag [#allocation4], %s237_s7  ;;  %s285_s3 = int_to_ptr.vmem [resolvable:$true] %s284_s3 }
  0x56   : > { %v264_v3 = vadd.s32 %v263_v2, %v262_v1  ;;  %s585_s18 = sshra.s32 %s287_s17, 4  ;;  %s591_s28 = scalar_lea.hbm %s852_s2, 16  ;;  %s586_s18 = int_to_ptr.hbm [resolvable:$true] %s585_s18 }
  0x57   : > { %s587_s22 = scalar_lea.hbm %s586_s18, 8  ;;  %p592_p10 = scmp.lt.s32.totalorder %s586_s18, %s852_s2 }
  0x58   : > { %vm265_vm0 = vcmp.lt.s32.totalorder %v264_v3, 1  ;;  %p588_p6 = scmp.ne.s32.totalorder %s586_s18, %s587_s22  ;;  %p593_p11 = scmp.lt.s32.totalorder %s591_s28, %s587_s22 }
  0x59   : > { %v266_v8 = vsel %vm265_vm0, %v258_v7, 0.0 }
  0x5a   : > { %270 = vst [vmem:[%s239_s21] sm:$0xff] %v266_v8  ;;  %p589_p8 = pnand %p588_p6, %p769_p12  ;;  %p594_p4 = por %p593_p11, %p592_p10 }
  0x5c   : > { %p590_p9 = pneg %p589_p8 }
  0x5e   : > { %p595_p1 = pnand %p594_p4, %p590_p9 }
  0x60   : > { %598 = shalt.err (!%p595_p1)
}
  0x61   : > { %409 = dma.vmem_to_hbm [thread:$0]  (%p769_p12), %s285_s3, 128, %s287_s17, %s272_s14  }
  0x62 PF: > { %s298_s6 = sand.u32 1, %s654_s9   ;;  %p412_p2 = pnand %p391_p0, %p773_p13 }
  0x63   : > { %s299_s30 = scalar_lea.sflag [#allocation4], %s298_s6 }
  0x64   : > { %p413_p3 = pneg %p412_p2 }
  0x66   : > { %644 = dma.done.wait (%p413_p3), %s299_s30, 128  }
  0x67   : > { %646 = vsyncadd (%p413_p3), %s299_s30, 4294967168  ;;  %s21_s16 = sadd.s32 1, %s682_s16   ;;  %s857_s9 = smov %s658_s10 }
  0x68   : > { %p18_p5 = scmp.ge.s32.totalorder %s21_s16, 4   ;;  %s858_s10 = smov %s662_s11 }
  0x69   : > { %s859_s11 = smov %s763_s24  ;;  %s860_s12 = smov %s670_s13 }
  0x6a   : > { %s840_s13 = smov 0   ;;  %s861_s14 = smov %s678_s15 }
  0x6b   : > { %s862_s15 = smov %s864_s19  ;;  %20 = sbr.rel (!%p18_p5) target bundleno = 9 (0x9), region = 90 }
  0x70   :  { %305 = vsyncpa [#allocation3], 1 }
  0x71   :  { %307 = vsyncpa [#allocation3 + $0x1], 1 }
  0x72   :  { %308 = vsyncpa [#allocation6], 1 }
  0x73   :  { %310 = vsyncpa [#allocation6 + $0x1], 1 }
  0x74   :  { %311 = vsyncpa [#allocation4], 1 }
  0x75   :  { %313 = vsyncpa [#allocation4 + $0x1], 1 }

</bundles_post_ra>
